<compile_context>
chip_gen: v6e
topology: v6e:2x2x1
jax: 0.10.0
libtpu: 0.0.40
codegen_flags: <defaults>
</compile_context>

<pallas_src>
import functools

import jax
import jax.numpy as jnp
from jax.experimental import pallas as pl
from jax.experimental.pallas import tpu as pltpu

BN_EPS = 1e-5
H = 32            # hidden width of each branch
LANES = 128       # fused / padded lane width
DEFAULT_TILE_B = 512


def _round_up(n, m):
    return ((n + m - 1) // m) * m


# ----------------------------------------------------------------------------
# Pass 1: fused 3-matmul MLP (both branches side by side in the lane dim)
#         + per-tile masked sum / sum-of-squares for the global BatchNorm.
# ----------------------------------------------------------------------------
def _mlp_stats_kernel(x_ref, w_ref, b_ref, z_ref, stats_ref, *, ctx, batch, tile_b):
    """w_ref rows: [0:128) block-diag layer-2, [128:256) block-diag layer-3
    (no bias; cancels in train-mode BN), [256:256+ctx) concatenated layer-1.
    b_ref rows: 0 = b1, 1 = b2 (f32). Outputs: z tile [tile_b,128] f32 and an
    [8,128] stats block (row 0 = masked sum, row 1 = masked sum of squares)."""
    x = x_ref[...].astype(jnp.bfloat16)            # bf16 LHS for the MXU
    w2 = w_ref[0:LANES, :]
    w3 = w_ref[LANES:2 * LANES, :]
    w1 = w_ref[2 * LANES:2 * LANES + ctx, :]
    b1 = b_ref[0:1, :]
    b2 = b_ref[1:2, :]

    h = jnp.dot(x, w1, preferred_element_type=jnp.float32) + b1
    h = jnp.maximum(h, 0.0).astype(jnp.bfloat16)
    h = jnp.dot(h, w2, preferred_element_type=jnp.float32) + b2
    h = jnp.maximum(h, 0.0).astype(jnp.bfloat16)
    z = jnp.dot(h, w3, preferred_element_type=jnp.float32)   # f32 [tile_b, 128]
    z_ref[...] = z

    # Mask rows that are batch padding so the global BN stats stay exact.
    row = (pl.program_id(0) * tile_b
           + jax.lax.broadcasted_iota(jnp.int32, (tile_b, LANES), 0))
    valid = row < batch
    zv = jnp.where(valid, z, 0.0)
    s0 = jnp.sum(zv, axis=0, keepdims=True)        # [1, 128] sum
    s1 = jnp.sum(zv * z, axis=0, keepdims=True)    # [1, 128] sum of squares
    stats_ref[...] = jnp.concatenate(
        [s0, s1, jnp.zeros((6, LANES), jnp.float32)], axis=0)


# ----------------------------------------------------------------------------
# Pass 2: apply the global BN affine (z*scale + shift) and a group-wise
#         log-softmax (dim lanes / min lanes), single exp pass.
# ----------------------------------------------------------------------------
def _bn_logsoftmax_kernel(z_ref, ab_ref, out_ref, *, n_dims):
    n_out = n_dims + 2
    z = z_ref[...]
    scale = ab_ref[0:1, :]
    shift = ab_ref[1:2, :]
    zbn = z * scale + shift

    col = jax.lax.broadcasted_iota(jnp.int32, zbn.shape, 1)
    dim_mask = col < n_dims
    any_mask = col < n_out
    NEG = jnp.float32(-1e30)

    md = jnp.max(jnp.where(dim_mask, zbn, NEG), axis=1, keepdims=True)
    mm = jnp.max(jnp.where(jnp.logical_and(any_mask, jnp.logical_not(dim_mask)),
                           zbn, NEG), axis=1, keepdims=True)
    gmax = jnp.where(dim_mask, md, mm)                       # per-lane group max
    e = jnp.exp(jnp.where(any_mask, zbn - gmax, NEG))        # single exp pass
    sum_d = jnp.sum(jnp.where(dim_mask, e, 0.0), axis=1, keepdims=True)
    sum_m = jnp.sum(e, axis=1, keepdims=True) - sum_d
    lse_d = md + jnp.log(sum_d)
    lse_m = mm + jnp.log(sum_m)

    out_ref[...] = jnp.where(dim_mask, zbn - lse_d,
                             jnp.where(any_mask, zbn - lse_m, NEG))


# ----------------------------------------------------------------------------
# Parameter packing (run ONCE per parameter update, outside the forward).
# ----------------------------------------------------------------------------
def pack_params(params, context_size, n_dims):
    """Pack the 16 small PyTorch-shaped parameters into:
       w_slab  [256 + ctx_pad, 128] bf16   (layer-2 blockdiag, layer-3 blockdiag,
                                            layer-1 concat)
       b_slab  [8, 128] f32                (row 0 = b1, row 1 = b2)
       gamma   [1, 128] f32, beta [1, 128] f32 (BN affine, lane-padded)."""
    n_out = n_dims + 2
    f32 = jnp.float32
    ctx_pad = _round_up(context_size, 8)

    def pad_lanes(a):
        return jnp.pad(a.astype(f32), ((0, 0), (0, LANES - a.shape[1])))

    # layer 1: both branches side by side -> [ctx_pad, 128]
    w1 = pad_lanes(jnp.concatenate([params["w_d1"], params["w_m1"]], axis=1))
    w1 = jnp.pad(w1, ((0, ctx_pad - context_size), (0, 0)))
    b1 = pad_lanes(jnp.concatenate([params["b_d1"], params["b_m1"]], axis=1))

    # layer 2: block-diagonal -> [128, 128]
    w2 = jnp.zeros((LANES, LANES), f32)
    w2 = w2.at[0:H, 0:H].set(params["w_d2"])
    w2 = w2.at[H:2 * H, H:2 * H].set(params["w_m2"])
    b2 = pad_lanes(jnp.concatenate([params["b_d2"], params["b_m2"]], axis=1))

    # layer 3: block-diagonal -> [128, 128]; b_dm / b_mm intentionally dropped
    # (a per-feature bias right before train-mode BN cancels exactly in z - mu).
    w3 = jnp.zeros((LANES, LANES), f32)
    w3 = w3.at[0:H, 0:n_dims].set(params["w_dm"])
    w3 = w3.at[H:2 * H, n_dims:n_out].set(params["w_mm"])

    w_slab = jnp.concatenate([w2, w3, w1], axis=0).astype(jnp.bfloat16)
    b_slab = jnp.concatenate([b1, b2, jnp.zeros((6, LANES), f32)], axis=0)
    gamma = jnp.concatenate(
        [params["g_d"], params["g_m"], jnp.ones((1, LANES - n_out), f32)], axis=1)
    beta = jnp.concatenate(
        [params["be_d"], params["be_m"], jnp.zeros((1, LANES - n_out), f32)], axis=1)
    return w_slab, b_slab, gamma, beta


# ----------------------------------------------------------------------------
# Forward wrappers.
# ----------------------------------------------------------------------------
def _split_sender_logprobs_impl(x, w_slab, b_slab, gamma, beta, n_dims, tile_b):
    B, ctx = x.shape
    n_out = n_dims + 2
    if tile_b is None:
        tile_b = min(DEFAULT_TILE_B, _round_up(B, 8))
    assert tile_b % 8 == 0, "tile_b must be a multiple of 8"
    b_pad = _round_up(B, tile_b)
    num_tiles = b_pad // tile_b
    if b_pad != B:
        x = jnp.pad(x, ((0, b_pad - B), (0, 0)))
    w_rows = w_slab.shape[0]

    parallel = pltpu.CompilerParams(dimension_semantics=("parallel",))

    # ---- pass 1: MLP + per-tile BN statistics -------------------------------
    z, stats = pl.pallas_call(
        functools.partial(_mlp_stats_kernel, ctx=ctx, batch=B, tile_b=tile_b),
        grid=(num_tiles,),
        in_specs=[
            pl.BlockSpec((tile_b, ctx), lambda i: (i, 0)),        # x tile
            pl.BlockSpec((w_rows, LANES), lambda i: (0, 0)),      # resident weights
            pl.BlockSpec((8, LANES), lambda i: (0, 0)),           # resident biases
        ],
        out_specs=[
            pl.BlockSpec((tile_b, LANES), lambda i: (i, 0)),      # z tile
            pl.BlockSpec((8, LANES), lambda i: (i, 0)),           # per-tile stats
        ],
        out_shape=[
            jax.ShapeDtypeStruct((b_pad, LANES), jnp.float32),
            jax.ShapeDtypeStruct((num_tiles * 8, LANES), jnp.float32),
        ],
        compiler_params=parallel,
    )(x, w_slab, b_slab)

    # ---- global BN statistics -> per-lane scale / shift (tiny, f32) ---------
    stats = stats.reshape(num_tiles, 8, LANES)
    total = jnp.sum(stats[:, 0, :], axis=0)
    total_sq = jnp.sum(stats[:, 1, :], axis=0)
    inv_b = 1.0 / float(B)
    mu = total * inv_b
    var = jnp.maximum(total_sq * inv_b - mu * mu, 0.0)   # biased variance (train)
    scale = gamma[0] * jax.lax.rsqrt(var + BN_EPS)
    shift = beta[0] - mu * scale
    ab = jnp.zeros((8, LANES), jnp.float32).at[0].set(scale).at[1].set(shift)

    # ---- pass 2: BN affine + grouped log-softmax ----------------------------
    logp = pl.pallas_call(
        functools.partial(_bn_logsoftmax_kernel, n_dims=n_dims),
        grid=(num_tiles,),
        in_specs=[
            pl.BlockSpec((tile_b, LANES), lambda i: (i, 0)),      # z tile
            pl.BlockSpec((8, LANES), lambda i: (0, 0)),           # resident scale/shift
        ],
        out_specs=pl.BlockSpec((tile_b, LANES), lambda i: (i, 0)),
        out_shape=jax.ShapeDtypeStruct((b_pad, LANES), jnp.float32),
        compiler_params=parallel,
    )(z, ab)

    # Single contiguous slice; dim/min split happens on this small array.
    return logp[:B, :n_out]


@functools.partial(jax.jit, static_argnames=("n_dims", "tile_b"))
def split_sender_logprobs(x, w_slab, b_slab, gamma, beta, n_dims, tile_b=None):
    """Returns grouped log-probs [B, n_dims+2] (dim lanes first, min lanes last)."""
    return _split_sender_logprobs_impl(x, w_slab, b_slab, gamma, beta, n_dims, tile_b)


@functools.partial(jax.jit, static_argnames=("n_dims", "tile_b"))
def split_sender_forward(x, w_slab, b_slab, gamma, beta, sample_key, n_dims,
                         tile_b=None):
    """Full forward (one jit): Pallas log-probs, then OneHotCategorical samples.

    Returns ((dim_probs, min_probs), (dim_msg_onehot, min_msg_onehot)) — the
    probs tuple stands in for the torch.distributions objects."""
    group_logp = _split_sender_logprobs_impl(
        x, w_slab, b_slab, gamma, beta, n_dims, tile_b)
    dim_logp = group_logp[:, :n_dims]
    min_logp = group_logp[:, n_dims:]
    k1, k2 = jax.random.split(sample_key)
    # Sample directly from log-probs (no log(prob) round-trip, no log(0) risk).
    dim_idx = jax.random.categorical(k1, dim_logp, axis=1)
    min_idx = jax.random.categorical(k2, min_logp, axis=1)
    dim_probs = jnp.exp(dim_logp)
    min_probs = jnp.exp(min_logp)
    dim_msg = jax.nn.one_hot(dim_idx, n_dims, dtype=jnp.float32)
    min_msg = jax.nn.one_hot(min_idx, 2, dtype=jnp.float32)
    return (dim_probs, min_probs), (dim_msg, min_msg)


# ----------------------------------------------------------------------------
# Synthetic parameters + pure-JAX reference (for correctness checking).
# ----------------------------------------------------------------------------
def init_params(key, context_size, n_dims):
    """Deterministic synthetic parameters (shapes match the PyTorch module)."""
    ks = jax.random.split(key, 12)

    def lin(kw, kb, fan_in, fan_out):
        # PyTorch Linear default init: U(-1/sqrt(fan_in), 1/sqrt(fan_in))
        bound = 1.0 / jnp.sqrt(float(fan_in))
        w = jax.random.uniform(kw, (fan_in, fan_out), jnp.float32, -bound, bound)
        b = jax.random.uniform(kb, (1, fan_out), jnp.float32, -bound, bound)
        return w, b

    w_d1, b_d1 = lin(ks[0], ks[1], context_size, H)
    w_d2, b_d2 = lin(ks[2], ks[3], H, H)
    w_dm, b_dm = lin(ks[4], ks[5], H, n_dims)
    w_m1, b_m1 = lin(ks[6], ks[7], context_size, H)
    w_m2, b_m2 = lin(ks[8], ks[9], H, H)
    w_mm, b_mm = lin(ks[10], ks[11], H, 2)

    return dict(
        w_d1=w_d1, b_d1=b_d1, w_d2=w_d2, b_d2=b_d2, w_dm=w_dm, b_dm=b_dm,
        w_m1=w_m1, b_m1=b_m1, w_m2=w_m2, b_m2=b_m2, w_mm=w_mm, b_mm=b_mm,
        # BatchNorm1d default affine params: gamma=1, beta=0
        g_d=jnp.ones((1, n_dims), jnp.float32), be_d=jnp.zeros((1, n_dims), jnp.float32),
        g_m=jnp.ones((1, 2), jnp.float32), be_m=jnp.zeros((1, 2), jnp.float32),
    )


def split_sender_probs_ref(x, params, matmul_dtype=jnp.float32):
    """Pure-JAX reference (keeps the final-layer biases, which cancel under
    training-mode BN). matmul_dtype=bfloat16 mirrors the kernel's MXU precision."""
    def mm(a, w):
        return jnp.dot(a.astype(matmul_dtype), w.astype(matmul_dtype),
                       preferred_element_type=jnp.float32)

    def bn(z, g, b):
        mu = jnp.mean(z, axis=0, keepdims=True)
        var = jnp.mean((z - mu) ** 2, axis=0, keepdims=True)  # biased variance
        return (z - mu) / jnp.sqrt(var + BN_EPS) * g + b

    h = jax.nn.relu(mm(x, params["w_d1"]) + params["b_d1"])
    h = jax.nn.relu(mm(h, params["w_d2"]) + params["b_d2"])
    dim_logits = mm(h, params["w_dm"]) + params["b_dm"]
    g_ = jax.nn.relu(mm(x, params["w_m1"]) + params["b_m1"])
    g_ = jax.nn.relu(mm(g_, params["w_m2"]) + params["b_m2"])
    min_logits = mm(g_, params["w_mm"]) + params["b_mm"]
    dim_p = jax.nn.softmax(bn(dim_logits, params["g_d"], params["be_d"]), axis=1)
    min_p = jax.nn.softmax(bn(min_logits, params["g_m"], params["be_m"]), axis=1)
    return dim_p, min_p


if __name__ == "__main__":
    B, CONTEXT_SIZE, N_DIMS = 8, 16, 8

    key = jax.random.PRNGKey(0)
    k_x, k_p, k_s, k_x2 = jax.random.split(key, 4)

    x = jax.random.normal(k_x, (B, CONTEXT_SIZE), jnp.float32)
    params = init_params(k_p, CONTEXT_SIZE, N_DIMS)

    # Slabs are built ONCE here (hoisted out of the jitted per-forward path).
    w_slab, b_slab, gamma, beta = pack_params(params, CONTEXT_SIZE, N_DIMS)

    (dim_probs, min_probs), (dim_msg, min_msg) = split_sender_forward(
        x, w_slab, b_slab, gamma, beta, k_s, N_DIMS)
    jax.block_until_ready((dim_probs, min_probs, dim_msg, min_msg))

    # Tight check vs a reference that mirrors the kernel's bf16 MXU precision.
    ref_dim_bf, ref_min_bf = split_sender_probs_ref(x, params, jnp.bfloat16)
    assert dim_probs.shape == (B, N_DIMS) and min_probs.shape == (B, 2)
    assert jnp.allclose(dim_probs, ref_dim_bf, atol=1e-4), "dim probs mismatch (bf16 ref)"
    assert jnp.allclose(min_probs, ref_min_bf, atol=1e-4), "min probs mismatch (bf16 ref)"
    # Loose check vs the pure-f32 reference (bounds bf16 matmul quantization).
    ref_dim, ref_min = split_sender_probs_ref(x, params)
    assert jnp.allclose(dim_probs, ref_dim, atol=5e-2), "dim probs drift vs f32 ref"
    assert jnp.allclose(min_probs, ref_min, atol=5e-2), "min probs drift vs f32 ref"
    assert jnp.allclose(jnp.sum(dim_probs, axis=1), 1.0, atol=1e-5)
    assert jnp.allclose(jnp.sum(min_probs, axis=1), 1.0, atol=1e-5)
    assert jnp.all(jnp.sum(dim_msg, axis=1) == 1.0)
    assert jnp.all(jnp.sum(min_msg, axis=1) == 1.0)

    # Multi-tile path check: B=20 with forced 8-row tiles -> 3 grid tiles and
    # 4 masked padding rows; BN statistics must remain global.
    x2 = jax.random.normal(k_x2, (20, CONTEXT_SIZE), jnp.float32)
    lp2 = split_sender_logprobs(x2, w_slab, b_slab, gamma, beta, N_DIMS, tile_b=8)
    jax.block_until_ready(lp2)
    p2 = jnp.exp(lp2)
    ref_d2, ref_m2 = split_sender_probs_ref(x2, params, jnp.bfloat16)
    assert jnp.allclose(p2[:, :N_DIMS], ref_d2, atol=1e-4), "multi-tile dim mismatch"
    assert jnp.allclose(p2[:, N_DIMS:], ref_m2, atol=1e-4), "multi-tile min mismatch"
    assert jnp.allclose(jnp.sum(p2[:, :N_DIMS], axis=1), 1.0, atol=1e-5)
    assert jnp.allclose(jnp.sum(p2[:, N_DIMS:], axis=1), 1.0, atol=1e-5)

    print("KERNEL_OK")
</pallas_src>

<mosaic_0001>
module attributes {stable_mosaic.version = 11 : i64} {
  func.func @_bn_logsoftmax_kernel(%arg0: i32, %arg1: memref<8x128xf32, #tpu.memory_space<vmem>>, %arg2: memref<8x128xf32, #tpu.memory_space<vmem>>, %arg3: memref<8x128xf32, #tpu.memory_space<vmem>>) attributes {dimension_semantics = [#tpu.dimension_semantics<parallel>], iteration_bounds = array<i64: 1>, scalar_prefetch = 0 : i64, scratch_operands = 0 : i64, tpu.core_type = #tpu.core_type<tc>, window_params = [{transform_indices = @transform_0, window_bounds = array<i64: 8, 128>}, {pipeline_mode = #tpu.pipeline_mode<synchronous>, transform_indices = @transform_1, window_bounds = array<i64: 8, 128>}, {transform_indices = @transform_2, window_bounds = array<i64: 8, 128>}]} {
    %c0 = arith.constant 0 : index
    %c0_0 = arith.constant 0 : index
    %0 = vector.load %arg1[%c0, %c0_0] : memref<8x128xf32, #tpu.memory_space<vmem>>, vector<8x128xf32>
    %c0_1 = arith.constant 0 : index
    %c0_2 = arith.constant 0 : index
    %1 = vector.load %arg2[%c0_1, %c0_2] : memref<8x128xf32, #tpu.memory_space<vmem>>, vector<1x128xf32>
    %c1 = arith.constant 1 : index
    %c0_3 = arith.constant 0 : index
    %2 = vector.load %arg2[%c1, %c0_3] : memref<8x128xf32, #tpu.memory_space<vmem>>, vector<1x128xf32>
    %3 = vector.broadcast %1 : vector<1x128xf32> to vector<8x128xf32>
    %4 = arith.mulf %0, %3 : vector<8x128xf32>
    %5 = vector.broadcast %2 : vector<1x128xf32> to vector<8x128xf32>
    %6 = arith.addf %4, %5 : vector<8x128xf32>
    %7 = tpu.iota {dimensions = array<i32: 1>} : vector<8x128xi32>
    %c8_i32 = arith.constant 8 : i32
    %8 = vector.broadcast %c8_i32 : i32 to vector<8x128xi32>
    %9 = arith.cmpi slt, %7, %8 : vector<8x128xi32>
    %c10_i32 = arith.constant 10 : i32
    %10 = vector.broadcast %c10_i32 : i32 to vector<8x128xi32>
    %11 = arith.cmpi slt, %7, %10 : vector<8x128xi32>
    %cst = arith.constant -1.000000e+30 : f32
    %12 = vector.broadcast %cst : f32 to vector<8x128xf32>
    %13 = arith.select %9, %6, %12 : vector<8x128xi1>, vector<8x128xf32>
    %cst_4 = arith.constant dense<0xFF800000> : vector<8xf32>
    %14 = vector.multi_reduction <maximumf>, %13, %cst_4 [1] : vector<8x128xf32> to vector<8xf32>
    %15 = vector.shape_cast %14 : vector<8xf32> to vector<8x1xf32>
    %cst_5 = arith.constant dense<true> : vector<8x128xi1>
    %16 = arith.xori %9, %cst_5 : vector<8x128xi1>
    %17 = arith.andi %11, %16 : vector<8x128xi1>
    %cst_6 = arith.constant -1.000000e+30 : f32
    %18 = vector.broadcast %cst_6 : f32 to vector<8x128xf32>
    %19 = arith.select %17, %6, %18 : vector<8x128xi1>, vector<8x128xf32>
    %cst_7 = arith.constant dense<0xFF800000> : vector<8xf32>
    %20 = vector.multi_reduction <maximumf>, %19, %cst_7 [1] : vector<8x128xf32> to vector<8xf32>
    %21 = vector.shape_cast %20 : vector<8xf32> to vector<8x1xf32>
    %22 = vector.shape_cast %15 : vector<8x1xf32> to vector<8x1xf32>
    %23 = vector.broadcast %22 : vector<8x1xf32> to vector<8x128xf32>
    %24 = vector.shape_cast %21 : vector<8x1xf32> to vector<8x1xf32>
    %25 = vector.broadcast %24 : vector<8x1xf32> to vector<8x128xf32>
    %26 = arith.select %9, %23, %25 : vector<8x128xi1>, vector<8x128xf32>
    %27 = arith.subf %6, %26 : vector<8x128xf32>
    %cst_8 = arith.constant -1.000000e+30 : f32
    %28 = vector.broadcast %cst_8 : f32 to vector<8x128xf32>
    %29 = arith.select %11, %27, %28 : vector<8x128xi1>, vector<8x128xf32>
    %30 = math.exp %29 : vector<8x128xf32>
    %cst_9 = arith.constant 0.000000e+00 : f32
    %31 = vector.broadcast %cst_9 : f32 to vector<8x128xf32>
    %32 = arith.select %9, %30, %31 : vector<8x128xi1>, vector<8x128xf32>
    %cst_10 = arith.constant dense<0.000000e+00> : vector<8xf32>
    %33 = vector.multi_reduction <add>, %32, %cst_10 [1] : vector<8x128xf32> to vector<8xf32>
    %34 = vector.shape_cast %33 : vector<8xf32> to vector<8x1xf32>
    %cst_11 = arith.constant dense<0.000000e+00> : vector<8xf32>
    %35 = vector.multi_reduction <add>, %30, %cst_11 [1] : vector<8x128xf32> to vector<8xf32>
    %36 = vector.shape_cast %35 : vector<8xf32> to vector<8x1xf32>
    %37 = arith.subf %36, %34 : vector<8x1xf32>
    %38 = math.log %34 : vector<8x1xf32>
    %39 = arith.addf %15, %38 : vector<8x1xf32>
    %40 = math.log %37 : vector<8x1xf32>
    %41 = arith.addf %21, %40 : vector<8x1xf32>
    %42 = vector.broadcast %39 : vector<8x1xf32> to vector<8x128xf32>
    %43 = arith.subf %6, %42 : vector<8x128xf32>
    %44 = vector.broadcast %41 : vector<8x1xf32> to vector<8x128xf32>
    %45 = arith.subf %6, %44 : vector<8x128xf32>
    %cst_12 = arith.constant -1.000000e+30 : f32
    %46 = vector.broadcast %cst_12 : f32 to vector<8x128xf32>
    %47 = arith.select %11, %45, %46 : vector<8x128xi1>, vector<8x128xf32>
    %48 = arith.select %9, %43, %47 : vector<8x128xi1>, vector<8x128xf32>
    %c0_13 = arith.constant 0 : index
    %c0_14 = arith.constant 0 : index
    %49 = vector.load %arg3[%c0_13, %c0_14] : memref<8x128xf32, #tpu.memory_space<vmem>>, vector<8x128xf32>
    tpu.vector_store %arg3[%c0_13, %c0_14], %48 {strides = array<i32>} : memref<8x128xf32, #tpu.memory_space<vmem>>, vector<8x128xf32>,
    return
  }
  func.func @transform_0(%arg0: i32) -> (i32, i32) {
    %c0_i32 = arith.constant 0 : i32
    %c0_i32_0 = arith.constant 0 : i32
    return %arg0, %c0_i32 : i32, i32
  }
  func.func @transform_1(%arg0: i32) -> (i32, i32) {
    %c0_i32 = arith.constant 0 : i32
    %c0_i32_0 = arith.constant 0 : i32
    %c0_i32_1 = arith.constant 0 : i32
    return %c0_i32, %c0_i32_0 : i32, i32
  }
  func.func @transform_2(%arg0: i32) -> (i32, i32) {
    %c0_i32 = arith.constant 0 : i32
    %c0_i32_0 = arith.constant 0 : i32
    return %arg0, %c0_i32 : i32, i32
  }
}

module attributes {stable_mosaic.version = 11 : i64} {
  func.func @_mlp_stats_kernel(%arg0: i32, %arg1: memref<8x16xf32, #tpu.memory_space<vmem>>, %arg2: memref<272x128xbf16, #tpu.memory_space<vmem>>, %arg3: memref<8x128xf32, #tpu.memory_space<vmem>>, %arg4: memref<8x128xf32, #tpu.memory_space<vmem>>, %arg5: memref<8x128xf32, #tpu.memory_space<vmem>>) attributes {dimension_semantics = [#tpu.dimension_semantics<parallel>], iteration_bounds = array<i64: 1>, scalar_prefetch = 0 : i64, scratch_operands = 0 : i64, tpu.core_type = #tpu.core_type<tc>, window_params = [{transform_indices = @transform_0, window_bounds = array<i64: 8, 16>}, {pipeline_mode = #tpu.pipeline_mode<synchronous>, transform_indices = @transform_1, window_bounds = array<i64: 272, 128>}, {pipeline_mode = #tpu.pipeline_mode<synchronous>, transform_indices = @transform_2, window_bounds = array<i64: 8, 128>}, {transform_indices = @transform_3, window_bounds = array<i64: 8, 128>}, {transform_indices = @transform_4, window_bounds = array<i64: 8, 128>}]} {
    %c0 = arith.constant 0 : index
    %c0_0 = arith.constant 0 : index
    %0 = vector.load %arg1[%c0, %c0_0] : memref<8x16xf32, #tpu.memory_space<vmem>>, vector<8x16xf32>
    %1 = arith.truncf %0 : vector<8x16xf32> to vector<8x16xbf16>
    %c0_1 = arith.constant 0 : index
    %c0_2 = arith.constant 0 : index
    %2 = vector.load %arg2[%c0_1, %c0_2] : memref<272x128xbf16, #tpu.memory_space<vmem>>, vector<128x128xbf16>
    %c128 = arith.constant 128 : index
    %c0_3 = arith.constant 0 : index
    %3 = vector.load %arg2[%c128, %c0_3] : memref<272x128xbf16, #tpu.memory_space<vmem>>, vector<128x128xbf16>
    %c256 = arith.constant 256 : index
    %c0_4 = arith.constant 0 : index
    %4 = vector.load %arg2[%c256, %c0_4] : memref<272x128xbf16, #tpu.memory_space<vmem>>, vector<16x128xbf16>
    %c0_5 = arith.constant 0 : index
    %c0_6 = arith.constant 0 : index
    %5 = vector.load %arg3[%c0_5, %c0_6] : memref<8x128xf32, #tpu.memory_space<vmem>>, vector<1x128xf32>
    %c1 = arith.constant 1 : index
    %c0_7 = arith.constant 0 : index
    %6 = vector.load %arg3[%c1, %c0_7] : memref<8x128xf32, #tpu.memory_space<vmem>>, vector<1x128xf32>
    %cst = arith.constant dense<0.000000e+00> : vector<8x128xf32>
    %7 = tpu.matmul %1, %4, %cst {dimension_numbers = #tpu.dot_dimension_numbers<[1], [0], [0], [1], [0, 0, 1, 1], [], []>} : vector<8x16xbf16>, vector<16x128xbf16>, vector<8x128xf32> -> vector<8x128xf32>
    %8 = vector.broadcast %5 : vector<1x128xf32> to vector<8x128xf32>
    %9 = arith.addf %7, %8 : vector<8x128xf32>
    %cst_8 = arith.constant 0.000000e+00 : f32
    %10 = vector.broadcast %cst_8 : f32 to vector<8x128xf32>
    %11 = arith.maximumf %9, %10 : vector<8x128xf32>
    %12 = arith.truncf %11 : vector<8x128xf32> to vector<8x128xbf16>
    %cst_9 = arith.constant dense<0.000000e+00> : vector<8x128xf32>
    %13 = tpu.matmul %12, %2, %cst_9 {dimension_numbers = #tpu.dot_dimension_numbers<[1], [0], [0], [1], [0, 0, 1, 1], [], []>} : vector<8x128xbf16>, vector<128x128xbf16>, vector<8x128xf32> -> vector<8x128xf32>
    %14 = vector.broadcast %6 : vector<1x128xf32> to vector<8x128xf32>
    %15 = arith.addf %13, %14 : vector<8x128xf32>
    %cst_10 = arith.constant 0.000000e+00 : f32
    %16 = vector.broadcast %cst_10 : f32 to vector<8x128xf32>
    %17 = arith.maximumf %15, %16 : vector<8x128xf32>
    %18 = arith.truncf %17 : vector<8x128xf32> to vector<8x128xbf16>
    %cst_11 = arith.constant dense<0.000000e+00> : vector<8x128xf32>
    %19 = tpu.matmul %18, %3, %cst_11 {dimension_numbers = #tpu.dot_dimension_numbers<[1], [0], [0], [1], [0, 0, 1, 1], [], []>} : vector<8x128xbf16>, vector<128x128xbf16>, vector<8x128xf32> -> vector<8x128xf32>
    %c0_12 = arith.constant 0 : index
    %c0_13 = arith.constant 0 : index
    %20 = vector.load %arg4[%c0_12, %c0_13] : memref<8x128xf32, #tpu.memory_space<vmem>>, vector<8x128xf32>
    tpu.vector_store %arg4[%c0_12, %c0_13], %19 {strides = array<i32>} : memref<8x128xf32, #tpu.memory_space<vmem>>, vector<8x128xf32>,
    %c8_i32 = arith.constant 8 : i32
    %21 = arith.muli %arg0, %c8_i32 : i32
    %22 = tpu.iota {dimensions = array<i32: 0>} : vector<8x128xi32>
    %23 = vector.broadcast %21 : i32 to vector<8x128xi32>
    %24 = arith.addi %23, %22 : vector<8x128xi32>
    %c8_i32_14 = arith.constant 8 : i32
    %25 = vector.broadcast %c8_i32_14 : i32 to vector<8x128xi32>
    %26 = arith.cmpi slt, %24, %25 : vector<8x128xi32>
    %cst_15 = arith.constant 0.000000e+00 : f32
    %27 = vector.broadcast %cst_15 : f32 to vector<8x128xf32>
    %28 = arith.select %26, %19, %27 : vector<8x128xi1>, vector<8x128xf32>
    %cst_16 = arith.constant dense<0.000000e+00> : vector<128xf32>
    %29 = vector.multi_reduction <add>, %28, %cst_16 [0] : vector<8x128xf32> to vector<128xf32>
    %30 = vector.shape_cast %29 : vector<128xf32> to vector<1x128xf32>
    %31 = arith.mulf %28, %19 : vector<8x128xf32>
    %cst_17 = arith.constant dense<0.000000e+00> : vector<128xf32>
    %32 = vector.multi_reduction <add>, %31, %cst_17 [0] : vector<8x128xf32> to vector<128xf32>
    %33 = vector.shape_cast %32 : vector<128xf32> to vector<1x128xf32>
    %cst_18 = arith.constant 0.000000e+00 : f32
    %34 = vector.broadcast %cst_18 : f32 to vector<6x128xf32>
    %35 = tpu.concatenate %30, %33, %34 in 0 : vector<1x128xf32>, vector<1x128xf32>, vector<6x128xf32> -> vector<8x128xf32>
    %c0_19 = arith.constant 0 : index
    %c0_20 = arith.constant 0 : index
    %36 = vector.load %arg5[%c0_19, %c0_20] : memref<8x128xf32, #tpu.memory_space<vmem>>, vector<8x128xf32>
    tpu.vector_store %arg5[%c0_19, %c0_20], %35 {strides = array<i32>} : memref<8x128xf32, #tpu.memory_space<vmem>>, vector<8x128xf32>,
    return
  }
  func.func @transform_0(%arg0: i32) -> (i32, i32) {
    %c0_i32 = arith.constant 0 : i32
    %c0_i32_0 = arith.constant 0 : i32
    return %arg0, %c0_i32 : i32, i32
  }
  func.func @transform_1(%arg0: i32) -> (i32, i32) {
    %c0_i32 = arith.constant 0 : i32
    %c0_i32_0 = arith.constant 0 : i32
    %c0_i32_1 = arith.constant 0 : i32
    return %c0_i32, %c0_i32_0 : i32, i32
  }
  func.func @transform_2(%arg0: i32) -> (i32, i32) {
    %c0_i32 = arith.constant 0 : i32
    %c0_i32_0 = arith.constant 0 : i32
    %c0_i32_1 = arith.constant 0 : i32
    return %c0_i32, %c0_i32_0 : i32, i32
  }
  func.func @transform_3(%arg0: i32) -> (i32, i32) {
    %c0_i32 = arith.constant 0 : i32
    %c0_i32_0 = arith.constant 0 : i32
    return %arg0, %c0_i32 : i32, i32
  }
  func.func @transform_4(%arg0: i32) -> (i32, i32) {
    %c0_i32 = arith.constant 0 : i32
    %c0_i32_0 = arith.constant 0 : i32
    return %arg0, %c0_i32 : i32, i32
  }
}

</mosaic_0001>

<bundles_post_ra>
// kernel: split_sender_forward.5
= control target key start
LH: loop header
LB: loop body
LE: loop exit
PB: predicated region body
PF: predicated region fallthrough
CT: control target
= control target key end

     0   :  { %v24_v0 = vlaneseq  ;;  %vm71_vm2 = vmmov 1   ;;  %s107_s0 = inlined_call_operand.vmem [shape: f32[8,128], index: 0, kind: input, shape index: {}]   ;;  %s108_s1 = inlined_call_operand.vmem [shape: f32[8,128], index: 1, kind: input, shape index: {}]   ;;  %s109_s2 = inlined_call_operand.vmem [shape: f32[8,128], index: 2, kind: output, shape index: {}]  }
   0x1   :  { %v11_v1 = vld [vmem:[%s107_s0] sm:$0xff] }
   0x2   :  { %v62_v2 = vld [vmem:[%s108_s1] ss:$0 sm:$0xff]  ;;  %v63_v3 = vld [vmem:[%s108_s1 + $0x1] ss:$0 sm:$0xff]  ;;  %v25_v5 = vand.u32 127, %v24_v0 }
   0x3   :  { %v18_v4 = vmul.f32 %v62_v2, %v11_v1 }
   0x4   :  { %vm26_vm0 = vcmp.lt.s32.totalorder %v25_v5, 8  ;;  %vm27_vm1 = vcmp.lt.s32.totalorder %v25_v5, 10 }
   0x5   :  { %v23_v6 = vadd.f32 %v63_v3, %v18_v4  ;;  %vm31_vm3 = vmxor %vm26_vm0, %vm71_vm2 }
   0x6   :  { %vm32_vm4 = vmand %vm27_vm1, %vm31_vm3 }
   0x7   :  { %v28_v7 = vsel %vm26_vm0, %v23_v6, -1e+30  ;;  %v33_v8 = vsel %vm32_vm4, %v23_v6, -1e+30 }
   0x8   :  { %29 = vmax.xlane.f32.xlu0 %v28_v7 }
   0xc   :  { %34 = vmax.xlane.f32.xlu0 %v33_v8 }
  0x91   :  { %v30_v9 = vpop.xlane.xlu0 %29 }
  0x95   :  { %v35_v10 = vpop.xlane.xlu0 %34 }
  0x96   :  { %v36_v11 = vsel %vm26_vm0, %v30_v9, %v35_v10 }
  0x97   :  { %v37_v12 = vsub.f32 %v23_v6, %v36_v11 }
  0x99   :  { %v38_v13 = vsel %vm27_vm1, %v37_v12, -1e+30 }
  0x9a   :  { %v39_v14 = vmul.f32 1.442695, %v38_v13 }
  0x9c   :  { %65 = vpow2.f32 %v39_v14 }
  0xa9   :  { %v66_v15 = vpop.eup %65 }
  0xaa   :  { %v41_v16 = vsel %vm26_vm0, %v66_v15, 0.0 }
  0xab   :  { %42 = vadd.xlane.f32.xlu1 %v41_v16 }
  0xaf   :  { %44 = vadd.xlane.f32.xlu1 %v66_v15 }
 0x134   :  { %v43_v17 = vpop.xlane.xlu1 %42 }
 0x135   :  { %67 = vlog2.f32 %v43_v17 }
 0x138   :  { %v45_v18 = vpop.xlane.xlu1 %44 }
 0x139   :  { %v46_v19 = vsub.f32 %v45_v18, %v43_v17 }
 0x13b   :  { %69 = vlog2.f32 %v46_v19 }
 0x142   :  { %v68_v20 = vpop.eup %67 }
 0x143   :  { %v48_v21 = vmul.f32 0.6931472, %v68_v20 }
 0x145   :  { %v49_v24 = vadd.f32 %v48_v21, %v30_v9 }
 0x147   :  { %v53_v27 = vsub.f32 %v23_v6, %v49_v24 }
 0x148   :  { %v70_v22 = vpop.eup %69 }
 0x149   :  { %v51_v23 = vmul.f32 0.6931472, %v70_v22 }
 0x14b   :  { %v52_v25 = vadd.f32 %v51_v23, %v35_v10 }
 0x14d   :  { %v54_v26 = vsub.f32 %v23_v6, %v52_v25 }
 0x14f   :  { %v55_v28 = vsel %vm27_vm1, %v54_v26, -1e+30 }
 0x150   :  { %v56_v29 = vsel %vm26_vm0, %v53_v27, %v55_v28 }
 0x151   :  { %57 = vst [vmem:[%s109_s2] sm:$0xff] %v56_v29 }

// kernel: split_sender_forward.4
= control target key start
LH: loop header
LB: loop body
LE: loop exit
PB: predicated region body
PF: predicated region fallthrough
CT: control target
= control target key end

     0   :  { %10 = vsyncpa [#allocation3], 0  ;;  %s472_s15 = smov [#allocation2]   ;;  %s540_s0 = inlined_call_operand.vmem [shape: f32[8,16], index: 0, kind: input, shape index: {}]   ;;  %s541_s1 = inlined_call_operand.hbm [shape: bf16[272,128], index: 1, kind: input, shape index: {}]   ;;  %s542_s2 = inlined_call_operand.vmem [shape: f32[8,128], index: 2, kind: input, shape index: {}]   ;;  %s543_s3 = inlined_call_operand.vmem [shape: f32[8,128], index: 3, kind: output, shape index: {0}]   ;;  %s544_s4 = inlined_call_operand.vmem [shape: f32[8,128], index: 4, kind: output, shape index: {1}]  }
   0x1   :  { %s18_s16 = sshll.u32 %s472_s15, 4  ;;  %s19_s16 = int_to_ptr.vmem [resolvable:$true] %s18_s16 }
   0x2   :  { %s458_s17 = scalar_lea.vmem %s19_s16, 2176  ;;  %p463_p1 = scmp.lt.s32.totalorder %s19_s16, %s19_s16 }
   0x3   :  { %p459_p0 = scmp.ne.s32.totalorder %s19_s16, %s458_s17  ;;  %p464_p2 = scmp.lt.s32.totalorder %s458_s17, %s458_s17 }
   0x5   :  { %p465_p3 = por %p464_p2, %p463_p1 }
   0x7   :  { %p466_p4 = pnand %p465_p3, %p459_p0 }
   0x9   :  { %469 = shalt.err (!%p466_p4)
}
   0xa   :  { %s473_s18 = smov 64   ;;  %s474_s19 = smov 4  }
   0xb   :  { %24 = dma.hbm_to_vmem [thread:$0]  %s541_s1, 2176, %s19_s16, [#allocation3], %s473_s18, %s473_s18, %s474_s19  }
   0xc   :  { %470 = dma.done.wait [#allocation3], 2176  }
   0xd   :  { %471 = vsyncadd [#allocation3], 4294965120  ;;  %v475_v0 = vmov 0.0   ;;  %vm476_vm0 = vmmov 0   ;;  %v433_v1 = vld [vmem:[#allocation2 + $0x80] sm:$0xff]   ;;  %vm79_vm1 = vcmask 130048  }
   0xe   :  { %382 = vmatprep.subr.bf16.mxu0 %v475_v0  ;;  %384 = vmatprep.mubr.msk.bf16.mxu0 %vm476_vm0, %v475_v0  ;;  %v31_v2 = vld [vmem:[%s540_s0] sm:$0xff]  ;;  %v434_v4 = vld [vmem:[#allocation2 + $0x38] sm:$0xff]   ;;  %v435_v5 = vld [vmem:[#allocation2 + $0x30] sm:$0xff]   ;;  %vm328_vm2 = vcmask 1040384   ;;  %vm330_vm3 = vcmask 1041408  }
   0xf   :  { %388 = vmatprep.subr.bf16.mxu1 %v475_v0  ;;  %404 = vmatprep.mubr.msk.bf16.mxu1 %vm476_vm0, %v475_v0  ;;  %v32_v3 = vpack.c.bf16 %v31_v2, %v31_v2  ;;  %v436_v6 = vld [vmem:[#allocation2 + $0x28] sm:$0xff]   ;;  %v437_v7 = vld [vmem:[#allocation2 + $0x20] sm:$0xff]   ;;  %v438_v8 = vld [vmem:[#allocation2 + $0x18] sm:$0xff]  }
  0x10   :  { %383 = vmatpush3.bf16.msra.mxu0 %v433_v1  ;;  %389 = vmatpush3.bf16.msra.mxu1 %v434_v4  ;;  %v439_v9 = vld [vmem:[#allocation2 + $0x10] sm:$0xff]   ;;  %v440_v10 = vld [vmem:[#allocation2 + $0x8] sm:$0xff]   ;;  %v441_v11 = vld [vmem:[#allocation2] sm:$0xff]  }
  0x11   :  { %408 = vmatprep.subr.bf16.mxu0 %v475_v0  ;;  %390 = vmatprep.subr.bf16.mxu1 %v475_v0  ;;  %v442_v12 = vld [vmem:[#allocation2 + $0x78] sm:$0xff]   ;;  %v443_v13 = vld [vmem:[#allocation2 + $0x70] sm:$0xff]   ;;  %v444_v14 = vld [vmem:[#allocation2 + $0x68] sm:$0xff]  }
  0x12   :  { %v445_v15 = vld [vmem:[#allocation2 + $0x60] sm:$0xff]   ;;  %v446_v16 = vld [vmem:[#allocation2 + $0x58] sm:$0xff]   ;;  %v447_v17 = vld [vmem:[#allocation2 + $0x50] sm:$0xff]  }
  0x13   :  { %385 = vmatmul.mubr.msk.bf16.vlgmr.msra.gmra.mxu0 %vm79_vm1, %v32_v3  ;;  %v342_v18 = vld [vmem:[%s542_s2] ss:$0 sm:$0xff]  ;;  %v448_v26 = vld [vmem:[#allocation2 + $0x48] sm:$0xff]   ;;  %v345_v28 = vld [vmem:[%s542_s2 + $0x1] ss:$0 sm:$0xff] }
  0x14   :  { %424 = vmatprep.mubr.msk.bf16.mxu0 %vm476_vm0, %v475_v0  ;;  %391 = vmatpush3.bf16.msra.mxu1 %v435_v5  ;;  %v449_v27 = vld [vmem:[#allocation2 + $0x40] sm:$0xff]  }
  0x15   :  { %392 = vmatprep.subr.bf16.mxu1 %v475_v0  ;;  %409 = vmatpush3.bf16.msra.mxu0 %v442_v12 }
  0x16   :  { %410 = vmatprep.subr.bf16.mxu0 %v475_v0 }
  0x18   :  { %393 = vmatpush3.bf16.msra.mxu1 %v436_v6 }
  0x19   :  { %394 = vmatprep.subr.bf16.mxu1 %v475_v0  ;;  %411 = vmatpush3.bf16.msra.mxu0 %v443_v13 }
  0x1a   :  { %412 = vmatprep.subr.bf16.mxu0 %v475_v0 }
  0x1c   :  { %395 = vmatpush3.bf16.msra.mxu1 %v437_v7 }
  0x1d   :  { %396 = vmatprep.subr.bf16.mxu1 %v475_v0  ;;  %413 = vmatpush3.bf16.msra.mxu0 %v444_v14 }
  0x1e   :  { %414 = vmatprep.subr.bf16.mxu0 %v475_v0 }
  0x20   :  { %397 = vmatpush3.bf16.msra.mxu1 %v438_v8 }
  0x21   :  { %398 = vmatprep.subr.bf16.mxu1 %v475_v0  ;;  %415 = vmatpush3.bf16.msra.mxu0 %v445_v15 }
  0x22   :  { %416 = vmatprep.subr.bf16.mxu0 %v475_v0 }
  0x24   :  { %399 = vmatpush3.bf16.msra.mxu1 %v439_v9 }
  0x25   :  { %400 = vmatprep.subr.bf16.mxu1 %v475_v0  ;;  %417 = vmatpush3.bf16.msra.mxu0 %v446_v16 }
  0x26   :  { %418 = vmatprep.subr.bf16.mxu0 %v475_v0 }
  0x28   :  { %401 = vmatpush3.bf16.msra.mxu1 %v440_v10 }
  0x29   :  { %402 = vmatprep.subr.bf16.mxu1 %v475_v0  ;;  %419 = vmatpush3.bf16.msra.mxu0 %v447_v17 }
  0x2a   :  { %420 = vmatprep.subr.bf16.mxu0 %v475_v0 }
  0x2c   :  { %403 = vmatpush3.bf16.msra.mxu1 %v441_v11 }
  0x2d   :  { %421 = vmatpush3.bf16.msra.mxu0 %v448_v26 }
  0x2e   :  { %422 = vmatprep.subr.bf16.mxu0 %v475_v0 }
  0x31   :  { %423 = vmatpush3.bf16.msra.mxu0 %v449_v27 }
  0xd3   :  { %v117_v19 = vpop.f32.mrf.mxu0 }
  0xd4   :  { %v118_v20 = vadd.f32 %v342_v18, %v117_v19 }
  0xd5   :  { %v386_v21 = vpop.f32.mrf.mxu0 }
  0xd6   :  { %v123_v22 = vmax.f32 %v118_v20, 0.0 }
  0xd7   :  { %v120_v23 = vpop.f32.mrf.mxu0 }
  0xd8   :  { %v124_v24 = vpack.c.bf16 %v123_v22, %v123_v22 }
  0xd9   :  { %v387_v25 = vpop.f32.mrf.mxu0 }
  0xda   :  { %405 = vmatmul.mubr.bf16.vlgmr.msra.gmra.mxu1 %v124_v24 }
 0x19a   :  { %v211_v29 = vpop.f32.mrf.mxu1 }
 0x19b   :  { %v212_v30 = vadd.f32 %v345_v28, %v211_v29 }
 0x19c   :  { %v406_v31 = vpop.f32.mrf.mxu1 }
 0x19d   :  { %v217_v32 = vmax.f32 %v212_v30, 0.0 }
 0x19e   :  { %v214_v33 = vpop.f32.mrf.mxu1 }
 0x19f   :  { %v218_v34 = vpack.c.bf16 %v217_v32, %v217_v32 }
 0x1a0   :  { %v407_v35 = vpop.f32.mrf.mxu1 }
 0x1a1   :  { %425 = vmatmul.mubr.bf16.vlgmr.msra.gmra.mxu0 %v218_v34 }
 0x261   :  { %v301_v36 = vpop.f32.mrf.mxu0 }
 0x262   :  { %307 = vst [vmem:[%s543_s3] sm:$0xff] %v301_v36  ;;  %v315_v37 = vrot.slane %v301_v36, 4  ;;  %v321_v38 = vmul.f32 %v301_v36, %v301_v36 }
 0x263   :  { %v426_v39 = vpop.f32.mrf.mxu0 }
 0x264   :  { %v316_v40 = vadd.f32 %v315_v37, %v301_v36  ;;  %v322_v41 = vrot.slane %v321_v38, 4 }
 0x265   :  { %v304_v42 = vpop.f32.mrf.mxu0 }
 0x266   :  { %v317_v43 = vrot.slane %v316_v40, 2  ;;  %v323_v44 = vadd.f32 %v322_v41, %v321_v38 }
 0x267   :  { %v427_v45 = vpop.f32.mrf.mxu0 }
 0x268   :  { %v318_v46 = vadd.f32 %v317_v43, %v316_v40  ;;  %v324_v47 = vrot.slane %v323_v44, 2 }
 0x26a   :  { %v319_v48 = vrot.slane %v318_v46, 1  ;;  %v325_v49 = vadd.f32 %v324_v47, %v323_v44 }
 0x26c   :  { %v326_v50 = vrot.slane %v325_v49, 1  ;;  %v320_v51 = vadd.f32 %v319_v48, %v318_v46 }
 0x26e   :  { %v327_v52 = vadd.f32 %v326_v50, %v325_v49 }
 0x270   :  { %v329_v53 = vsel %vm328_vm2, %v320_v51, %v327_v52 }
 0x271   :  { %v331_v54 = vsel %vm330_vm3, %v329_v53, 0.0 }
 0x272   :  { %332 = vst [vmem:[%s544_s4] sm:$0xff] %v331_v54 }
 0x273   :  { %341 = vsyncpa [#allocation3], 1 }

</bundles_post_ra>
